<compile_context>
chip_gen: v7x
topology: tpu7x:2x2x1
jax: 0.10.0
libtpu: 0.0.40
codegen_flags: <defaults>
</compile_context>

<pallas_src>
import math

import jax
import jax.numpy as jnp
from jax.experimental import pallas as pl
from jax.experimental.pallas import tpu as pltpu


_LANE_CANDIDATES = (2048, 1024, 512, 256, 128)
_DEFAULT_BLOCK_BYTES = 2 * 1024 * 1024  # per-buffer block target; double-buffered
                                        # in+out stays well under scoped VMEM.


def _drop_path_kernel(m_ref, x_ref, o_ref):
    # (tile_r, 1) per-row keep factor broadcast over the lane axis, native dtype.
    o_ref[...] = x_ref[...] * m_ref[...]


def _choose_layout(batch, feat, itemsize, block_bytes):
    """Pick a dense (rows, lane) view of the (B, F) tensor plus a row tile."""
    lane = None
    # Widest lane count (multiple of 128) that still leaves >= 8 rows, so both
    # sublanes and lanes of each vreg carry data even for small batches.
    for c in _LANE_CANDIDATES:
        if feat % c == 0 and (batch * feat) // c >= 8:
            lane = c
            break
    if lane is None:  # fall back to the narrowest dividing lane width
        for c in reversed(_LANE_CANDIDATES):
            if feat % c == 0:
                lane = c
                break
    if lane is None:  # F not a multiple of 128: keep the whole feature axis
        lane = feat
    rows = (batch * feat) // lane

    tile_r = max(8, (block_bytes // (lane * itemsize)) // 8 * 8)
    if rows <= tile_r:
        tile_r = rows  # single block; block_shape == full array dim is legal
    return rows, lane, tile_r


def drop_path(x, *, seed, drop_prob=0.0, training=False, scale_by_keep=True,
              block_bytes=_DEFAULT_BLOCK_BYTES):
    """JAX/Pallas equivalent of the PyTorch drop_path forward pass."""
    if drop_prob == 0.0 or not training:
        return x

    keep_prob = 1.0 - drop_prob
    B = int(x.shape[0])
    F = int(math.prod(x.shape[1:]))
    itemsize = jnp.dtype(x.dtype).itemsize

    # Per-sample bernoulli(keep_prob), scaled once; tiny (B, 1) array.
    keep = jax.random.bernoulli(jax.random.PRNGKey(seed), p=keep_prob, shape=(B, 1))
    scale = (1.0 / keep_prob) if (scale_by_keep and keep_prob > 0.0) else 1.0
    mask = keep.astype(x.dtype) * jnp.asarray(scale, dtype=x.dtype)  # (B, 1)

    rows, lane, tile_r = _choose_layout(B, F, itemsize, block_bytes)
    x2 = x.reshape(rows, lane)
    reps = rows // B
    mask_rows = jnp.repeat(mask, reps, axis=0) if reps > 1 else mask  # (rows, 1)

    grid = (pl.cdiv(rows, tile_r),)
    out = pl.pallas_call(
        _drop_path_kernel,
        out_shape=jax.ShapeDtypeStruct((rows, lane), x.dtype),
        grid=grid,
        in_specs=[
            pl.BlockSpec((tile_r, 1), lambda i: (i, 0)),       # per-row keep factor
            pl.BlockSpec((tile_r, lane), lambda i: (i, 0)),    # x row-tile
        ],
        out_specs=pl.BlockSpec((tile_r, lane), lambda i: (i, 0)),
        compiler_params=pltpu.CompilerParams(
            dimension_semantics=("parallel",),
        ),
        cost_estimate=pl.CostEstimate(
            flops=rows * lane,
            transcendentals=0,
            bytes_accessed=2 * rows * lane * itemsize + rows * itemsize,
        ),
    )(mask_rows, x2)

    # TODO(synk): add a custom_vjp reusing the same per-sample mask for training.
    return out.reshape(x.shape)


class DropPath:
    """Mirror of the PyTorch DropPath module (no parameters)."""

    def __init__(self, drop_prob: float = 0.0, scale_by_keep: bool = True):
        self.drop_prob = drop_prob
        self.scale_by_keep = scale_by_keep
        self.training = True

    def __call__(self, x, seed=0):
        return drop_path(
            x,
            seed=seed,
            drop_prob=self.drop_prob,
            training=self.training,
            scale_by_keep=self.scale_by_keep,
        )


def _reference(x, seed, drop_prob, scale_by_keep=True):
    """Pure-JAX reference using the same mask derivation as the wrapper."""
    keep_prob = 1.0 - drop_prob
    B = x.shape[0]
    keep = jax.random.bernoulli(jax.random.PRNGKey(seed), p=keep_prob, shape=(B, 1))
    scale = (1.0 / keep_prob) if (scale_by_keep and keep_prob > 0.0) else 1.0
    mask = keep.astype(x.dtype) * jnp.asarray(scale, dtype=x.dtype)
    return x * mask.reshape((B,) + (1,) * (x.ndim - 1))


if __name__ == "__main__":
    key = jax.random.PRNGKey(0)

    # Test 1: NCHW input, batch=2, channels=4, spatial=16x16 (single tile).
    x = jax.random.normal(key, (2, 4, 16, 16), dtype=jnp.float32)
    module = DropPath(drop_prob=0.25, scale_by_keep=True)
    module.training = True
    y = jax.block_until_ready(module(x, seed=42))

    keep_prob = 1.0 - module.drop_prob
    for b in range(x.shape[0]):
        is_zero = bool(jnp.all(y[b] == 0))
        is_scaled = bool(jnp.allclose(y[b], x[b] / keep_prob, atol=1e-5, rtol=1e-5))
        assert is_zero or is_scaled, f"sample {b}: unexpected mask behaviour"
    assert bool(jnp.allclose(y, _reference(x, 42, 0.25), atol=1e-5, rtol=1e-5))

    # Test 2: multi-tile grid with a ragged last row-tile (B=10, tiny block budget).
    x2 = jax.random.normal(jax.random.PRNGKey(1), (10, 4, 16, 16), dtype=jnp.float32)
    y2 = jax.block_until_ready(
        drop_path(x2, seed=7, drop_prob=0.5, training=True, scale_by_keep=True,
                  block_bytes=32 * 1024))
    assert bool(jnp.allclose(y2, _reference(x2, 7, 0.5), atol=1e-5, rtol=1e-5))

    # Eval / drop_prob=0 path is the identity.
    module.training = False
    y_eval = jax.block_until_ready(module(x, seed=42))
    assert bool(jnp.all(y_eval == x))

    print("KERNEL_OK")
</pallas_src>

<mosaic_0001>
module attributes {stable_mosaic.version = 11 : i64} {
  func.func @_drop_path_kernel(%arg0: i32, %arg1: memref<8x1xf32, #tpu.memory_space<vmem>>, %arg2: memref<8x256xf32, #tpu.memory_space<vmem>>, %arg3: memref<8x256xf32, #tpu.memory_space<vmem>>) attributes {dimension_semantics = [#tpu.dimension_semantics<parallel>], iteration_bounds = array<i64: 1>, scalar_prefetch = 0 : i64, scratch_operands = 0 : i64, tpu.core_type = #tpu.core_type<tc>, window_params = [{transform_indices = @transform_0, window_bounds = array<i64: 8, 1>}, {transform_indices = @transform_1, window_bounds = array<i64: 8, 256>}, {transform_indices = @transform_2, window_bounds = array<i64: 8, 256>}]} {
    %c0 = arith.constant 0 : index
    %c0_0 = arith.constant 0 : index
    %0 = vector.load %arg2[%c0, %c0_0] : memref<8x256xf32, #tpu.memory_space<vmem>>, vector<8x256xf32>
    %c0_1 = arith.constant 0 : index
    %c0_2 = arith.constant 0 : index
    %1 = vector.load %arg1[%c0_1, %c0_2] : memref<8x1xf32, #tpu.memory_space<vmem>>, vector<8x1xf32>
    %2 = vector.broadcast %1 : vector<8x1xf32> to vector<8x256xf32>
    %3 = arith.mulf %0, %2 : vector<8x256xf32>
    %c0_3 = arith.constant 0 : index
    %c0_4 = arith.constant 0 : index
    %4 = vector.load %arg3[%c0_3, %c0_4] : memref<8x256xf32, #tpu.memory_space<vmem>>, vector<8x256xf32>
    tpu.vector_store %arg3[%c0_3, %c0_4], %3 {strides = array<i32>} : memref<8x256xf32, #tpu.memory_space<vmem>>, vector<8x256xf32>,
    return
  }
  func.func @transform_0(%arg0: i32) -> (i32, i32) {
    %c0_i32 = arith.constant 0 : i32
    %c0_i32_0 = arith.constant 0 : i32
    return %arg0, %c0_i32 : i32, i32
  }
  func.func @transform_1(%arg0: i32) -> (i32, i32) {
    %c0_i32 = arith.constant 0 : i32
    %c0_i32_0 = arith.constant 0 : i32
    return %arg0, %c0_i32 : i32, i32
  }
  func.func @transform_2(%arg0: i32) -> (i32, i32) {
    %c0_i32 = arith.constant 0 : i32
    %c0_i32_0 = arith.constant 0 : i32
    return %arg0, %c0_i32 : i32, i32
  }
}

</mosaic_0001>

<bundles_post_ra>
// kernel: tpu_custom_call.1
= control target key start
LH: loop header
LB: loop body
LE: loop exit
PB: predicated region body
PF: predicated region fallthrough
CT: control target
= control target key end

     0   :  { %7 = vsyncpa [#allocation3], 0  ;;  %s148_s0 = inlined_call_operand.vmem [shape: f32[8,1], index: 0, kind: input, shape index: {}]   ;;  %s149_s1 = inlined_call_operand.hbm [shape: f32[8,256], index: 1, kind: input, shape index: {}]   ;;  %s150_s2 = inlined_call_operand.hbm [shape: f32[8,256], index: 2, kind: output, shape index: {}]  }
   0x1   :  { %8 = vsyncpa [#allocation4], 0  ;;  %s103_s9 = smov [#allocation2]   ;;  %s55_s13 = scalar_lea.hbm %s149_s1, 256 }
   0x2   :  { %s17_s10 = sshll.u32 %s103_s9, 4  ;;  %p56_p0 = scmp.ne.s32.totalorder %s149_s1, %s55_s13  ;;  %s18_s10 = int_to_ptr.vmem [resolvable:$true] %s17_s10 }
   0x3   :  { %p59_p1 = scmp.lt.u32.totalorder %s55_s13, %s149_s1 }
   0x5   :  { %p61_p2 = pnand %p59_p1, %p56_p0 }
   0x7   :  { %64 = shalt.err (!%p61_p2)
}
   0x8   :  { %s65_s18 = scalar_lea.vmem %s18_s10, 256  ;;  %p70_p4 = scmp.lt.s32.totalorder %s18_s10, %s18_s10 }
   0x9   :  { %p66_p3 = scmp.ne.s32.totalorder %s18_s10, %s65_s18  ;;  %p71_p5 = scmp.lt.s32.totalorder %s65_s18, %s65_s18 }
   0xb   :  { %p72_p6 = por %p71_p5, %p70_p4 }
   0xd   :  { %p73_p7 = pnand %p72_p6, %p66_p3 }
   0xf   :  { %76 = shalt.err (!%p73_p7)
}
  0x10   :  { %20 = dma.hbm_to_vmem [thread:$0]  %s149_s1, 256, %s18_s10, [#allocation3]  }
  0x11   :  { %99 = dma.done.wait [#allocation3], 256  }
  0x12   :  { %100 = vsyncadd [#allocation3], 4294967040  ;;  %v104_v0 = vmov 0   ;;  %v26_v1 = vld [vmem:[%s148_s0] sm:$0xff]  ;;  %v25_v3 = vld [vmem:[#allocation2 + $0x8] sm:$0xff]  ;;  %s105_s23 = smov [#allocation5]  }
  0x13   :  { %54 = vset.pattern.permute.xlu0 %v104_v0  ;;  %v24_v2 = vld [vmem:[#allocation2] sm:$0xff]  ;;  %s42_s24 = sshll.u32 %s105_s23, 4  ;;  %s43_s24 = int_to_ptr.vmem [resolvable:$true] %s42_s24 }
  0x14   :  { %29 = vperm.xlu0 %54, %v26_v1   ;;  %s77_s1 = scalar_lea.vmem %s43_s24, 256  ;;  %p82_p9 = scmp.lt.s32.totalorder %s43_s24, %s43_s24 }
  0x15   :  { %p78_p8 = scmp.ne.s32.totalorder %s43_s24, %s77_s1  ;;  %p83_p10 = scmp.lt.s32.totalorder %s77_s1, %s77_s1 }
  0x17   :  { %p84_p11 = por %p83_p10, %p82_p9 }
  0x19   :  { %p85_p12 = pnand %p84_p11, %p78_p8 }
  0x93   :  { %v30_v4 = vpop.permute.xlu0 %29 }
  0x94   :  { %v32_v5 = vmul.f32 %v30_v4, %v24_v2  ;;  %v33_v6 = vmul.f32 %v30_v4, %v25_v3 }
  0x96   :  { %34 = vst [vmem:[#allocation5] sm:$0xff] %v32_v5  ;;  %35 = vst [vmem:[#allocation5 + $0x8] sm:$0xff] %v33_v6 }
  0x97   :  { %88 = shalt.err (!%p85_p12)
}
  0x98   :  { %s89_s26 = scalar_lea.hbm %s150_s2, 256 }
  0x99   :  { %p90_p13 = scmp.ne.s32.totalorder %s150_s2, %s89_s26  ;;  %p93_p0 = scmp.lt.u32.totalorder %s89_s26, %s150_s2 }
  0x9b   :  { %p95_p1 = pnand %p93_p0, %p90_p13 }
  0x9d   :  { %98 = shalt.err (!%p95_p1)
}
  0x9e   :  { %45 = dma.vmem_to_hbm [thread:$0]  %s43_s24, 256, %s150_s2, [#allocation4]  }
  0x9f   :  { %101 = dma.done.wait [#allocation4], 256  }
  0xa0   :  { %102 = vsyncadd [#allocation4], 4294967040 }
  0xa1   :  { %49 = vsyncpa [#allocation3], 1 }
  0xa2   :  { %50 = vsyncpa [#allocation4], 1 }

</bundles_post_ra>
